<compile_context>
chip_gen: v7x
topology: tpu7x:2x2x1
jax: 0.10.0
libtpu: 0.0.40
codegen_flags: <defaults>
</compile_context>

<pallas_src>
import jax
import jax.numpy as jnp
from jax import lax
from jax.experimental import pallas as pl
from jax.experimental.pallas import tpu as pltpu

EPS = 1e-5  # PyTorch BatchNorm2d default eps


# ------------------------------ Pallas kernel ------------------------------ #
def _conv_bn_relu_kernel(x_ref, w_ref, scale_ref, shift_ref, mask_ref, o_ref,
                         xp_ref, xk_ref):
    """One Conv2DBlock on a lane-dense (C, rows*T) slab.

    x_ref     : (Cin,   tm)        activation block, tm = rows*T on the lane axis
    w_ref     : (Cout,  kw*Cin)    conv weights, tap-major / channel-minor
    scale_ref : (Cout,  1)         folded BN scale  (gamma / sqrt(var+eps))
    shift_ref : (Cout,  1)         folded conv-bias + BN shift
    mask_ref  : (kw,    tm)        1.0 where tap dk stays inside its time row
    o_ref     : (Cout,  tm)
    xp_ref    : (Cin,   tm+2*pad)  VMEM staging buffer with halo columns
    xk_ref    : (kw*Cin, tm)       VMEM im2col buffer
    """
    cin, tm = x_ref.shape
    kw = mask_ref.shape[0]
    pad = (kw - 1) // 2

    # Stage the block with kw-1 halo columns so every tap is a plain
    # lane-shifted window read (no wrapper-side jnp.pad / extra HBM traffic).
    if pad:
        xp_ref[:, :pad] = jnp.zeros((cin, pad), xp_ref.dtype)
        xp_ref[:, pad + tm:pad + tm + pad] = jnp.zeros((cin, pad), xp_ref.dtype)
    xp_ref[:, pad:pad + tm] = x_ref[...]

    # im2col: stack the kw shifted (and row-boundary-masked) copies of the
    # input along the contraction axis.
    for dk in range(kw):
        xs = xp_ref[:, dk:dk + tm]
        if dk != pad:                       # center tap never crosses a row edge
            xs = xs * mask_ref[dk:dk + 1, :]
        xk_ref[dk * cin:(dk + 1) * cin, :] = xs

    # Single contraction over kw*Cin; lanes (= rows*time) stay fully dense.
    y = jnp.dot(w_ref[...], xk_ref[...], preferred_element_type=jnp.float32)
    y = y * scale_ref[...] + shift_ref[...]           # conv bias + eval-BN (folded)
    o_ref[...] = jnp.maximum(y, 0.0).astype(o_ref.dtype)   # ReLU


# --------------------------------- wrapper ---------------------------------- #
def _pick_rows(n_rows, t, max_lanes=32768):
    """Largest whole-time-row tile whose lane width is a multiple of 128."""
    for r in range(n_rows, 0, -1):
        if n_rows % r == 0 and (r * t) % 128 == 0 and r * t <= max_lanes:
            return r
    return n_rows  # block == full array dims is always legal


def conv2d_block_pallas(x, params, *, stride=1):
    """Conv2DBlock forward.  x: (B, Cin, K, T) float32 -> (B, Cout, K, T_out)."""
    B, Cin, K, T = x.shape
    w = params['w']                                    # (Cout, Cin, kw)
    Cout, _, kw = w.shape
    assert kw % 2 == 1, "even kernel_size not supported"  # TODO(synk): even kw
    pad = (kw - 1) // 2

    # Fold conv bias + eval-mode BatchNorm into per-channel scale / shift.
    scale = params['gamma'] / jnp.sqrt(params['var'] + EPS)            # (Cout,)
    shift = (params['b'] - params['mu']) * scale + params['beta']      # (Cout,)
    w2 = jnp.transpose(w, (0, 2, 1)).reshape(Cout, kw * Cin)           # tap-major

    # Lane-dense layout: channels lead, flattened (B,K,T) rows*time on lanes.
    # (pure layout plumbing in the wrapper — no jnp.pad of the activation)
    N = B * K
    M = N * T
    x2 = jnp.transpose(x, (1, 0, 2, 3)).reshape(Cin, M)

    rows = _pick_rows(N, T)
    tm = rows * T
    grid = (M // tm,)

    # Per-tap validity mask of the flattened time rows (identical for every
    # block since each block starts on a row boundary).  Tiny, computed once.
    t_of_col = jnp.arange(tm, dtype=jnp.int32) % T
    mask = jnp.stack(
        [((t_of_col + (dk - pad) >= 0) & (t_of_col + (dk - pad) < T))
         .astype(jnp.float32) for dk in range(kw)], axis=0)            # (kw, tm)

    out2 = pl.pallas_call(
        _conv_bn_relu_kernel,
        out_shape=jax.ShapeDtypeStruct((Cout, M), jnp.float32),
        grid=grid,
        in_specs=[
            pl.BlockSpec((Cin, tm), lambda i: (0, i)),
            pl.BlockSpec((Cout, kw * Cin), lambda i: (0, 0)),
            pl.BlockSpec((Cout, 1), lambda i: (0, 0)),
            pl.BlockSpec((Cout, 1), lambda i: (0, 0)),
            pl.BlockSpec((kw, tm), lambda i: (0, 0)),
        ],
        out_specs=pl.BlockSpec((Cout, tm), lambda i: (0, i)),
        scratch_shapes=[
            pltpu.VMEM((Cin, tm + 2 * pad), jnp.float32),   # halo staging
            pltpu.VMEM((kw * Cin, tm), jnp.float32),        # im2col buffer
        ],
        compiler_params=pltpu.CompilerParams(
            dimension_semantics=("parallel",),     # megacore / v7x 2-TC split
            vmem_limit_bytes=48 * 1024 * 1024,     # headroom under v7x 64 MiB
        ),
    )(x2, w2, scale.reshape(Cout, 1), shift.reshape(Cout, 1), mask)

    y = jnp.transpose(out2.reshape(Cout, B, K, T), (1, 0, 2, 3))
    if stride > 1:
        # Strided conv == stride-1 conv sampled every `stride` output steps.
        # TODO(synk): fold the stride into the kernel's output tiling.
        y = y[:, :, :, ::stride]
    return y


# --------------------------- deterministic params --------------------------- #
def init_block_params(key, cin, cout, kw):
    ks = jax.random.split(key, 6)
    return dict(
        w=0.1 * jax.random.normal(ks[0], (cout, cin, kw), jnp.float32),
        b=0.05 * jax.random.normal(ks[1], (cout,), jnp.float32),
        gamma=1.0 + 0.1 * jax.random.normal(ks[2], (cout,), jnp.float32),
        beta=0.05 * jax.random.normal(ks[3], (cout,), jnp.float32),
        mu=0.05 * jax.random.normal(ks[4], (cout,), jnp.float32),
        var=1.0 + jnp.abs(0.1 * jax.random.normal(ks[5], (cout,), jnp.float32)),
    )


# ------------------------------ JAX reference ------------------------------- #
def ref_conv2d_block(x, p, *, stride=1):
    kw = p['w'].shape[-1]
    pad = (kw - 1) // 2
    y = lax.conv_general_dilated(
        x, p['w'][:, :, None, :], window_strides=(1, stride),
        padding=((0, 0), (pad, pad)),
        dimension_numbers=('NCHW', 'OIHW', 'NCHW'))
    y = y + p['b'][None, :, None, None]
    s = (p['gamma'] / jnp.sqrt(p['var'] + EPS))[None, :, None, None]
    y = (y - p['mu'][None, :, None, None]) * s + p['beta'][None, :, None, None]
    return jnp.maximum(y, 0.0)


# ----------------------------------- main ------------------------------------ #
if __name__ == "__main__":
    B, Cin, K, T = 2, 4, 16, 16
    Cout, kernel_size = 8, 3

    key = jax.random.PRNGKey(0)
    kx, kp1, kp2 = jax.random.split(key, 3)
    x = jax.random.normal(kx, (B, Cin, K, T), jnp.float32)

    # stride = 1
    params1 = init_block_params(kp1, Cin, Cout, kernel_size)
    out1 = jax.jit(lambda a: conv2d_block_pallas(a, params1, stride=1))(x)
    out1 = jax.block_until_ready(out1)
    ref1 = ref_conv2d_block(x, params1, stride=1)
    assert out1.shape == ref1.shape, (out1.shape, ref1.shape)
    err1 = float(jnp.max(jnp.abs(out1 - ref1)))
    assert jnp.allclose(out1, ref1, atol=2e-3, rtol=2e-3), err1

    # stride = 2
    params2 = init_block_params(kp2, Cin, Cout, kernel_size)
    out2 = jax.jit(lambda a: conv2d_block_pallas(a, params2, stride=2))(x)
    out2 = jax.block_until_ready(out2)
    ref2 = ref_conv2d_block(x, params2, stride=2)
    assert out2.shape == ref2.shape, (out2.shape, ref2.shape)
    err2 = float(jnp.max(jnp.abs(out2 - ref2)))
    assert jnp.allclose(out2, ref2, atol=2e-3, rtol=2e-3), err2

    print("KERNEL_OK")
</pallas_src>

<mosaic_0001>
module attributes {stable_mosaic.version = 11 : i64} {
  func.func @_conv_bn_relu_kernel(%arg0: i32, %arg1: memref<4x512xf32, #tpu.memory_space<vmem>>, %arg2: memref<8x12xf32, #tpu.memory_space<vmem>>, %arg3: memref<8x1xf32, #tpu.memory_space<vmem>>, %arg4: memref<8x1xf32, #tpu.memory_space<vmem>>, %arg5: memref<3x512xf32, #tpu.memory_space<vmem>>, %arg6: memref<8x512xf32, #tpu.memory_space<vmem>>, %arg7: memref<4x514xf32, #tpu.memory_space<vmem>>, %arg8: memref<12x512xf32, #tpu.memory_space<vmem>>) attributes {dimension_semantics = [#tpu.dimension_semantics<parallel>], iteration_bounds = array<i64: 1>, scalar_prefetch = 0 : i64, scratch_operands = 2 : i64, tpu.core_type = #tpu.core_type<tc>, window_params = [{transform_indices = @transform_0, window_bounds = array<i64: 4, 512>}, {pipeline_mode = #tpu.pipeline_mode<synchronous>, transform_indices = @transform_1, window_bounds = array<i64: 8, 12>}, {pipeline_mode = #tpu.pipeline_mode<synchronous>, transform_indices = @transform_2, window_bounds = array<i64: 8, 1>}, {pipeline_mode = #tpu.pipeline_mode<synchronous>, transform_indices = @transform_3, window_bounds = array<i64: 8, 1>}, {pipeline_mode = #tpu.pipeline_mode<synchronous>, transform_indices = @transform_4, window_bounds = array<i64: 3, 512>}, {transform_indices = @transform_5, window_bounds = array<i64: 8, 512>}]} {
    %cst = arith.constant 0.000000e+00 : f32
    %0 = vector.broadcast %cst : f32 to vector<4x1xf32>
    %c0 = arith.constant 0 : index
    %c0_0 = arith.constant 0 : index
    %1 = vector.load %arg7[%c0, %c0_0] : memref<4x514xf32, #tpu.memory_space<vmem>>, vector<4x1xf32>
    tpu.vector_store %arg7[%c0, %c0_0], %0 {strides = array<i32>} : memref<4x514xf32, #tpu.memory_space<vmem>>, vector<4x1xf32>,
    %cst_1 = arith.constant 0.000000e+00 : f32
    %2 = vector.broadcast %cst_1 : f32 to vector<4x1xf32>
    %c0_2 = arith.constant 0 : index
    %c513 = arith.constant 513 : index
    %3 = vector.load %arg7[%c0_2, %c513] : memref<4x514xf32, #tpu.memory_space<vmem>>, vector<4x1xf32>
    tpu.vector_store %arg7[%c0_2, %c513], %2 {strides = array<i32>} : memref<4x514xf32, #tpu.memory_space<vmem>>, vector<4x1xf32>,
    %c0_3 = arith.constant 0 : index
    %c0_4 = arith.constant 0 : index
    %4 = vector.load %arg1[%c0_3, %c0_4] : memref<4x512xf32, #tpu.memory_space<vmem>>, vector<4x512xf32>
    %c0_5 = arith.constant 0 : index
    %c1 = arith.constant 1 : index
    %5 = vector.load %arg7[%c0_5, %c1] : memref<4x514xf32, #tpu.memory_space<vmem>>, vector<4x512xf32>
    tpu.vector_store %arg7[%c0_5, %c1], %4 {strides = array<i32>} : memref<4x514xf32, #tpu.memory_space<vmem>>, vector<4x512xf32>,
    %c0_6 = arith.constant 0 : index
    %c0_7 = arith.constant 0 : index
    %6 = vector.load %arg7[%c0_6, %c0_7] : memref<4x514xf32, #tpu.memory_space<vmem>>, vector<4x512xf32>
    %c0_8 = arith.constant 0 : index
    %c0_9 = arith.constant 0 : index
    %7 = vector.load %arg5[%c0_8, %c0_9] : memref<3x512xf32, #tpu.memory_space<vmem>>, vector<1x512xf32>
    %8 = vector.broadcast %7 : vector<1x512xf32> to vector<4x512xf32>
    %9 = arith.mulf %6, %8 : vector<4x512xf32>
    %c0_10 = arith.constant 0 : index
    %c0_11 = arith.constant 0 : index
    %10 = vector.load %arg8[%c0_10, %c0_11] : memref<12x512xf32, #tpu.memory_space<vmem>>, vector<4x512xf32>
    tpu.vector_store %arg8[%c0_10, %c0_11], %9 {strides = array<i32>} : memref<12x512xf32, #tpu.memory_space<vmem>>, vector<4x512xf32>,
    %c0_12 = arith.constant 0 : index
    %c1_13 = arith.constant 1 : index
    %11 = vector.load %arg7[%c0_12, %c1_13] : memref<4x514xf32, #tpu.memory_space<vmem>>, vector<4x512xf32>
    %c4 = arith.constant 4 : index
    %c0_14 = arith.constant 0 : index
    %12 = vector.load %arg8[%c4, %c0_14] : memref<12x512xf32, #tpu.memory_space<vmem>>, vector<4x512xf32>
    tpu.vector_store %arg8[%c4, %c0_14], %11 {strides = array<i32>} : memref<12x512xf32, #tpu.memory_space<vmem>>, vector<4x512xf32>,
    %c0_15 = arith.constant 0 : index
    %c2 = arith.constant 2 : index
    %13 = vector.load %arg7[%c0_15, %c2] : memref<4x514xf32, #tpu.memory_space<vmem>>, vector<4x512xf32>
    %c2_16 = arith.constant 2 : index
    %c0_17 = arith.constant 0 : index
    %14 = vector.load %arg5[%c2_16, %c0_17] : memref<3x512xf32, #tpu.memory_space<vmem>>, vector<1x512xf32>
    %15 = vector.broadcast %14 : vector<1x512xf32> to vector<4x512xf32>
    %16 = arith.mulf %13, %15 : vector<4x512xf32>
    %c8 = arith.constant 8 : index
    %c0_18 = arith.constant 0 : index
    %17 = vector.load %arg8[%c8, %c0_18] : memref<12x512xf32, #tpu.memory_space<vmem>>, vector<4x512xf32>
    tpu.vector_store %arg8[%c8, %c0_18], %16 {strides = array<i32>} : memref<12x512xf32, #tpu.memory_space<vmem>>, vector<4x512xf32>,
    %c0_19 = arith.constant 0 : index
    %c0_20 = arith.constant 0 : index
    %18 = vector.load %arg2[%c0_19, %c0_20] : memref<8x12xf32, #tpu.memory_space<vmem>>, vector<8x12xf32>
    %c0_21 = arith.constant 0 : index
    %c0_22 = arith.constant 0 : index
    %19 = vector.load %arg8[%c0_21, %c0_22] : memref<12x512xf32, #tpu.memory_space<vmem>>, vector<12x512xf32>
    %cst_23 = arith.constant dense<0.000000e+00> : vector<8x512xf32>
    %20 = tpu.matmul %18, %19, %cst_23 {dimension_numbers = #tpu.dot_dimension_numbers<[1], [0], [0], [1], [0, 0, 1, 1], [], []>} : vector<8x12xf32>, vector<12x512xf32>, vector<8x512xf32> -> vector<8x512xf32>
    %c0_24 = arith.constant 0 : index
    %c0_25 = arith.constant 0 : index
    %21 = vector.load %arg3[%c0_24, %c0_25] : memref<8x1xf32, #tpu.memory_space<vmem>>, vector<8x1xf32>
    %22 = vector.broadcast %21 : vector<8x1xf32> to vector<8x512xf32>
    %23 = arith.mulf %20, %22 : vector<8x512xf32>
    %c0_26 = arith.constant 0 : index
    %c0_27 = arith.constant 0 : index
    %24 = vector.load %arg4[%c0_26, %c0_27] : memref<8x1xf32, #tpu.memory_space<vmem>>, vector<8x1xf32>
    %25 = vector.broadcast %24 : vector<8x1xf32> to vector<8x512xf32>
    %26 = arith.addf %23, %25 : vector<8x512xf32>
    %cst_28 = arith.constant 0.000000e+00 : f32
    %27 = vector.broadcast %cst_28 : f32 to vector<8x512xf32>
    %28 = arith.maximumf %26, %27 : vector<8x512xf32>
    %c0_29 = arith.constant 0 : index
    %c0_30 = arith.constant 0 : index
    %29 = vector.load %arg6[%c0_29, %c0_30] : memref<8x512xf32, #tpu.memory_space<vmem>>, vector<8x512xf32>
    tpu.vector_store %arg6[%c0_29, %c0_30], %28 {strides = array<i32>} : memref<8x512xf32, #tpu.memory_space<vmem>>, vector<8x512xf32>,
    return
  }
  func.func @transform_0(%arg0: i32) -> (i32, i32) {
    %c0_i32 = arith.constant 0 : i32
    %c0_i32_0 = arith.constant 0 : i32
    return %c0_i32, %arg0 : i32, i32
  }
  func.func @transform_1(%arg0: i32) -> (i32, i32) {
    %c0_i32 = arith.constant 0 : i32
    %c0_i32_0 = arith.constant 0 : i32
    %c0_i32_1 = arith.constant 0 : i32
    return %c0_i32, %c0_i32_0 : i32, i32
  }
  func.func @transform_2(%arg0: i32) -> (i32, i32) {
    %c0_i32 = arith.constant 0 : i32
    %c0_i32_0 = arith.constant 0 : i32
    %c0_i32_1 = arith.constant 0 : i32
    return %c0_i32, %c0_i32_0 : i32, i32
  }
  func.func @transform_3(%arg0: i32) -> (i32, i32) {
    %c0_i32 = arith.constant 0 : i32
    %c0_i32_0 = arith.constant 0 : i32
    %c0_i32_1 = arith.constant 0 : i32
    return %c0_i32, %c0_i32_0 : i32, i32
  }
  func.func @transform_4(%arg0: i32) -> (i32, i32) {
    %c0_i32 = arith.constant 0 : i32
    %c0_i32_0 = arith.constant 0 : i32
    %c0_i32_1 = arith.constant 0 : i32
    return %c0_i32, %c0_i32_0 : i32, i32
  }
  func.func @transform_5(%arg0: i32) -> (i32, i32) {
    %c0_i32 = arith.constant 0 : i32
    %c0_i32_0 = arith.constant 0 : i32
    return %c0_i32, %arg0 : i32, i32
  }
}

</mosaic_0001>

<bundles_post_ra>
// kernel: _lambda_.1
= control target key start
LH: loop header
LB: loop body
LE: loop exit
PB: predicated region body
PF: predicated region fallthrough
CT: control target
= control target key end

     0   :  { %v52_v0 = vlaneseq  ;;  %vm20_vm0 = vcmask 3072   ;;  %v412_v2 = vmov 0.0   ;;  %s413_s20 = smov 1   ;;  %vm22_vm1 = vcmask 11272   ;;  %s416_s27 = smov 126   ;;  %s509_s0 = inlined_call_operand.vmem [shape: f32[4,512], index: 0, kind: input, shape index: {}]   ;;  %s510_s4 = inlined_call_operand.vmem [shape: f32[3,512], index: 4, kind: input, shape index: {}]   ;;  %s511_s2 = inlined_call_operand.vmem [shape: f32[8,1], index: 2, kind: input, shape index: {}]   ;;  %s512_s3 = inlined_call_operand.vmem [shape: f32[8,1], index: 3, kind: input, shape index: {}]   ;;  %s513_s1 = inlined_call_operand.vmem [shape: f32[8,12], index: 1, kind: input, shape index: {}]   ;;  %s514_s5 = inlined_call_operand.vmem [shape: f32[8,512], index: 5, kind: output, shape index: {}]  }
   0x1   :  { %v24_v1 = vld [vmem:[%s509_s0] sm:$0xff]  ;;  %21 = vst.msk [vmem:[#allocation2] sm:$0xf] %vm20_vm0, %v412_v2  ;;  %344 = vmatprep.mubr.f32.mxu1 %v412_v2  ;;  %273 = vmatprep.mubr.f32.mxu0 %v412_v2  ;;  %v25_v3 = vld [vmem:[%s509_s0 + $0x8] sm:$0xff]  ;;  %s414_s0 = smov 2   ;;  %vm42_vm2 = vcmask 1043464  }
   0x2   :  { %28 = vrot.lane.b32.xlu0 %v24_v1, %s413_s20  ;;  %v53_v4 = vshrl.u32 %v52_v0, 7  ;;  %v383_v5 = vld [vmem:[%s510_s4 + $0x2] ss:$4 sm:$0xf]  ;;  %23 = vst.msk [vmem:[#allocation2 + $0x10] sm:$0xf] %vm22_vm1, %v412_v2 }
   0x3   :  { %v50_v6 = vld [vmem:[%s510_s4] ss:$4 sm:$0xf]  ;;  %vm43_vm3 = vcmask 1047556   ;;  %vm34_vm4 = vcmask 7168   ;;  %vm36_vm6 = vcmask 1043456  }
   0x4   :  { %v54_v7 = vsub.s32 0, %v53_v4  ;;  %v58_v8 = vsub.s32 1, %v53_v4  ;;  %v62_v9 = vsub.s32 2, %v53_v4  ;;  %v66_v10 = vsub.s32 3, %v53_v4  ;;  %vm44_vm5 = vmor %vm43_vm3, %vm42_vm2  ;;  %s415_s4 = smov 127   ;;  %v351_v52 = vld [vmem:[%s511_s2] sm:$0xff] }
   0x5   :  { %vm146_vm7 = vcmask 15360   ;;  %v417_v51 = vmov 0   ;;  %v361_v53 = vld [vmem:[%s512_s3] sm:$0xff]  ;;  %vm103_vm8 = vcmask 1039360   ;;  %vm171_vm9 = vcmask 1031168  }
   0x6   :  { %30 = vrot.lane.b32.xlu0 %v25_v3, %s413_s20  ;;  %v125_v11 = vrot.slane %v383_v5, %v54_v7  ;;  %v129_v12 = vrot.slane %v383_v5, %v58_v8  ;;  %v55_v13 = vrot.slane %v50_v6, %v54_v7  ;;  %v59_v14 = vrot.slane %v50_v6, %v58_v8 }
   0x7   :  { %v133_v15 = vrot.slane %v383_v5, %v62_v9  ;;  %v137_v16 = vrot.slane %v383_v5, %v66_v10  ;;  %v63_v17 = vrot.slane %v50_v6, %v62_v9  ;;  %v67_v18 = vrot.slane %v50_v6, %v66_v10  ;;  %409 = vset.pattern.permute.xlu0 %v417_v51 }
   0x8   :  { %v138_v19 = vcombine.low %v125_v11, %v129_v12  ;;  %v68_v20 = vcombine.low %v55_v13, %v59_v14  ;;  %410 = vset.pattern.permute.xlu1 %v417_v51  ;;  %vm418_vm10 = vmmov 1   ;;  %vm193_vm12 = vcmask 97280  }
   0x9   :  { %v69_v21 = vcombine.low %v63_v17, %v67_v18  ;;  %v139_v22 = vcombine.low %v133_v15, %v137_v16  ;;  %vm482_vm11 = vmpackc.low %vm36_vm6, %vm418_vm10  ;;  %v184_v18 = vld [vmem:[%s513_s1] sm:$0xff] }
   0xa   :  { %140 = vrot.lane.b32.xlu1 %v138_v19, %s414_s0 }
   0xe   :  { %142 = vrot.lane.b32.xlu1 %v139_v22, %s414_s0 }
  0x74   :  { %v29_v23 = vpop.permute.xlu0 %28 }
  0x75   :  { %v32_v24 = vrot.slane %v29_v23, 4 }
  0x77   :  { %v35_v25 = vsel %vm34_vm4, %v32_v24, %v29_v23 }
  0x78   :  { %45 = vst.msk [vmem:[#allocation2] sm:$0xff] %vm44_vm5, %v35_v25  ;;  %v31_v26 = vpop.permute.xlu0 %30 }
  0x79   :  { %v33_v27 = vrot.slane %v31_v26, 4 }
  0x7b   :  { %v37_v28 = vsel %vm36_vm6, %v32_v24, %v33_v27  ;;  %47 = vst.msk [vmem:[#allocation2 + $0x10] sm:$0xf] %vm20_vm0, %v33_v27 }
  0x7c   :  { %v38_v29 = vsel %vm34_vm4, %v37_v28, %v31_v26  ;;  %v141_v30 = vpop.permute.xlu1 %140 }
  0x7d   :  { %v73_v31 = vmul.f32 %v69_v21, %v38_v29  ;;  %v144_v32 = vrot.slane %v141_v30, 4  ;;  %v91_v48 = vcombine.low %v38_v29, %v38_v29 }
  0x7f   :  { %v48_v33 = vld [vmem:[#allocation2] sm:$0xff]  ;;  %82 = vst [vmem:[#allocation3 + $0x10] sm:$0xf] %v73_v31  ;;  %v147_v34 = vsel %vm146_vm7, %v144_v32, %v141_v30  ;;  %v77_v35 = vcombine.high %v73_v31, %v73_v31 }
  0x80   :  { %v143_v36 = vpop.permute.xlu1 %142  ;;  %95 = vrot.lane.b32.xlu0 %v48_v33, %s415_s4  ;;  %v72_v37 = vmul.f32 %v68_v20, %v48_v33  ;;  %v153_v39 = vmul.f32 %v147_v34, %v48_v33  ;;  %v90_v50 = vcombine.low %v48_v33, %v48_v33 }
  0x81   :  { %v145_v38 = vrot.slane %v143_v36, 4  ;;  %83 = vst [vmem:[#allocation3 + $0x18] sm:$0xf] %v77_v35 }
  0x82   :  { %v411_v40 = vld [vmem:[#allocation2 + $0x10] ss:$0 sps:$4 sm:$0xff]   ;;  %v76_v41 = vcombine.high %v72_v37, %v72_v37  ;;  %80 = vst [vmem:[#allocation3] sm:$0xf] %v72_v37  ;;  %v159_v47 = vcombine.high %v153_v39, %v153_v39 }
  0x83   :  { %v118_v42 = vld [vmem:[#allocation2 + $0x10] sm:$0xf]  ;;  %v148_v43 = vsel %vm36_vm6, %v144_v32, %v145_v38  ;;  %101 = vrot.lane.b32.xlu1 %v411_v40, %s415_s4 }
  0x84   :  { %v149_v44 = vsel %vm146_vm7, %v148_v43, %v143_v36  ;;  %99 = vrot.lane.b32.xlu0 %v38_v29, %s415_s4  ;;  %81 = vst [vmem:[#allocation3 + $0x8] sm:$0xf] %v76_v41  ;;  %v155_v46 = vmul.f32 %v145_v38, %v118_v42 }
  0x85   :  { %v154_v45 = vmul.f32 %v149_v44, %v38_v29 }
  0x87   :  { %169 = vrot.lane.b32.xlu1 %v155_v46, %s416_s27  ;;  %v160_v49 = vcombine.high %v154_v45, %v154_v45 }
  0x88   :  { %163 = vrot.lane.b32.xlu0 %v159_v47, %s416_s27 }
  0x8b   :  { %97 = vrot.lane.b32.xlu1 %v91_v48, %s415_s4 }
  0x8c   :  { %167 = vrot.lane.b32.xlu0 %v160_v49, %s416_s27 }
  0x8f   :  { %165 = vrot.lane.b32.xlu1 %v154_v45, %s416_s27 }
  0x90   :  { %93 = vrot.lane.b32.xlu0 %v90_v50, %s415_s4 }
  0x93   :  { %161 = vrot.lane.b32.xlu1 %v153_v39, %s416_s27 }
  0x94   :  { %354 = vperm.xlu0 %409, %v351_v52  }
  0x97   :  { %364 = vperm.xlu1 %410, %v361_v53  }
  0xf2   :  { %v96_v54 = vpop.permute.xlu0 %95 }
  0xf5   :  { %v102_v55 = vpop.permute.xlu1 %101 }
  0xf6   :  { %v100_v56 = vpop.permute.xlu0 %99 }
  0xf7   :  { %v107_v57 = vsel %vm103_vm8, %v100_v56, %v102_v55 }
  0xf8   :  { %115 = vst [vmem:[#allocation3 + $0x18] sm:$0xf0] %v107_v57 }
  0xf9   :  { %v170_v58 = vpop.permute.xlu1 %169 }
  0xfa   :  { %v164_v59 = vpop.permute.xlu0 %163 }
  0xfd   :  { %v98_v60 = vpop.permute.xlu1 %97 }
  0xfe   :  { %v168_v61 = vpop.permute.xlu0 %167  ;;  %v105_v62 = vsel %vm103_vm8, %v96_v54, %v98_v60  ;;  %v106_v63 = vsel %vm103_vm8, %v98_v60, %v100_v56 }
  0xff   :  { %v175_v0 = vsel %vm171_vm9, %v168_v61, %v170_v58  ;;  %113 = vst [vmem:[#allocation3 + $0x8] sm:$0xf0] %v105_v62  ;;  %114 = vst [vmem:[#allocation3 + $0x10] sm:$0xf0] %v106_v63  ;;  %v188_v8 = vld [vmem:[#allocation3 + $0x18] sm:$0xff] }
 0x100   :  { %183 = vst [vmem:[#allocation3 + $0x38] sm:$0xf] %v175_v0 }
 0x101   :  { %v166_v1 = vpop.permute.xlu1 %165 }
 0x102   :  { %v94_v2 = vpop.permute.xlu0 %93  ;;  %v173_v3 = vsel %vm171_vm9, %v164_v59, %v166_v1  ;;  %v174_v4 = vsel %vm171_vm9, %v166_v1, %v168_v61 }
 0x103   :  { %v104_v5 = vsel %vm103_vm8, %v94_v2, %v96_v54  ;;  %181 = vst [vmem:[#allocation3 + $0x28] sm:$0xf] %v173_v3  ;;  %182 = vst [vmem:[#allocation3 + $0x30] sm:$0xf] %v174_v4 }
 0x104   :  { %112 = vst [vmem:[#allocation3] sm:$0xf0] %v104_v5 }
 0x105   :  { %v162_v6 = vpop.permute.xlu1 %161 }
 0x106   :  { %v172_v7 = vsel %vm171_vm9, %v162_v6, %v164_v59  ;;  %v186_v12 = vld [vmem:[#allocation3 + $0x8] sm:$0xff]  ;;  %v187_v14 = vld [vmem:[#allocation3 + $0x10] sm:$0xff] }
 0x107   :  { %v192_v9 = vld [vmem:[#allocation3 + $0x38] sm:$0xf]  ;;  %180 = vst [vmem:[#allocation3 + $0x20] sm:$0xf] %v172_v7 }
 0x108   :  { %v396_v11 = vpack.c.bf16 %v192_v9, %v188_v8 }
 0x10a   :  { %398 = vmatprep.subr.msk.bf16.mxu1 %vm482_vm11, %v396_v11  ;;  %v190_v13 = vld [vmem:[#allocation3 + $0x28] sm:$0xf]  ;;  %v191_v15 = vld [vmem:[#allocation3 + $0x30] sm:$0xf] }
 0x10b   :  { %v390_v16 = vpack.c.bf16 %v190_v13, %v186_v12  ;;  %v399_v17 = vpack.c.bf16 %v191_v15, %v187_v14  ;;  %v185_v19 = vld [vmem:[#allocation3] sm:$0xff] }
 0x10d   :  { %392 = vmatprep.subr.msk.bf16.mxu0 %vm482_vm11, %v390_v16  ;;  %401 = vmatpush1.bf16.msk.msra.mxu1 %vm482_vm11, %v399_v17 }
 0x10e   :  { %v189_v20 = vld [vmem:[#allocation3 + $0x20] sm:$0xf] }
 0x10f   :  { %v393_v21 = vpack.c.bf16 %v189_v20, %v185_v19 }
 0x110   :  { %389 = vmatmul.mubr.msk.f32.vlgmr.msra.gmra.mrb[0].mxu1 %vm193_vm12, %v184_v18 }
 0x111   :  { %395 = vmatpush1.bf16.msk.msra.mxu0 %vm482_vm11, %v393_v21 }
 0x113   :  { %v355_v22 = vpop.permute.xlu0 %354 }
 0x114   :  { %386 = vmatmul.mubr.msk.f32.vlgmr.msra.gmra.mrb[0].mxu0 %vm193_vm12, %v184_v18 }
 0x116   :  { %v365_v24 = vpop.permute.xlu1 %364 }
 0x1e3   :  { %v346_v23 = vpop.f32.mrb[0].mxu1 }
 0x1e4   :  { %v348_v25 = vpop.f32.mrb[1].mxu1  ;;  %v359_v26 = vmul.f32 %v355_v22, %v346_v23 }
 0x1e5   :  { %v360_v27 = vmul.f32 %v355_v22, %v348_v25 }
 0x1e6   :  { %v369_v28 = vadd.f32 %v365_v24, %v359_v26 }
 0x1e7   :  { %v275_v29 = vpop.f32.mrb[0].mxu0  ;;  %v370_v30 = vadd.f32 %v365_v24, %v360_v27 }
 0x1e8   :  { %v357_v31 = vmul.f32 %v355_v22, %v275_v29  ;;  %v277_v32 = vpop.f32.mrb[1].mxu0  ;;  %v373_v33 = vmax.f32 %v369_v28, 0.0 }
 0x1e9   :  { %v358_v34 = vmul.f32 %v355_v22, %v277_v32  ;;  %v374_v35 = vmax.f32 %v370_v30, 0.0 }
 0x1ea   :  { %v367_v36 = vadd.f32 %v365_v24, %v357_v31  ;;  %377 = vst [vmem:[%s514_s5 + $0x10] sm:$0xff] %v373_v33 }
 0x1eb   :  { %v368_v37 = vadd.f32 %v365_v24, %v358_v34  ;;  %378 = vst [vmem:[%s514_s5 + $0x18] sm:$0xff] %v374_v35 }
 0x1ec   :  { %v371_v38 = vmax.f32 %v367_v36, 0.0 }
 0x1ed   :  { %v372_v39 = vmax.f32 %v368_v37, 0.0 }
 0x1ee   :  { %375 = vst [vmem:[%s514_s5] sm:$0xff] %v371_v38 }
 0x1ef   :  { %376 = vst [vmem:[%s514_s5 + $0x8] sm:$0xff] %v372_v39 }

</bundles_post_ra>
